<compile_context>
chip_gen: v7x
topology: tpu7x:2x2x1
jax: 0.10.0
libtpu: 0.0.40
codegen_flags: <defaults>
</compile_context>

<pallas_src>
import functools

import jax
import jax.numpy as jnp
from jax.experimental import pallas as pl
from jax.experimental.pallas import tpu as pltpu


HIDDEN = 128
# Per-tile VMEM at tile_b=2048: x (<=1 MiB) + out (1 MiB) double-buffered,
# ~4 MiB of f32 intermediates, ~0.3 MiB of resident weights -> well under the
# 32 MiB scoped-VMEM default on every generation (incl. v7x).
TILE_B_MAX = 2048


def _round_up(n, m):
    return ((n + m - 1) // m) * m


def _choose_tile_b(batch):
    """Pick a batch-tile size: multiple of 8, VMEM-safe, >=2 grid steps when
    the batch is big enough for v7x's two TensorCores to both get work."""
    b8 = _round_up(batch, 8)
    if b8 <= 256:
        return b8  # single tile; too small to be worth splitting
    return min(TILE_B_MAX, _round_up(pl.cdiv(b8, 2), 8))


def _policy_kernel(x_ref, w1_ref, b1_ref, w2_ref, b2_ref, wh_ref, bh_ref,
                   out_ref, *, out_dim):
    x = x_ref[...]

    # Layer 1: Linear + tanh.  K = in_f (unpadded); Mosaic pads K on the MXU.
    h1 = jnp.tanh(
        jnp.dot(x, w1_ref[...], preferred_element_type=jnp.float32) + b1_ref[...])

    # Layer 2: Linear + tanh.
    h2 = jnp.tanh(
        jnp.dot(h1, w2_ref[...], preferred_element_type=jnp.float32) + b2_ref[...])

    # Fused heads: one matmul over [128, n_pad] = [Wloc || Wsc || zero-pad].
    z = jnp.dot(h2, wh_ref[...], preferred_element_type=jnp.float32) + bh_ref[...]

    # Numerically-stable softplus (matches F.softplus incl. its threshold) on
    # the scale half, identity on the loc half.  For out_dim <= 64 the head is
    # a single 128-lane vreg per row, so computing sp over all lanes and
    # selecting is the cheapest formulation (EUP slot is otherwise idle here).
    sp = jnp.maximum(z, 0.0) + jnp.log1p(jnp.exp(-jnp.abs(z)))
    col = jax.lax.broadcasted_iota(jnp.int32, z.shape, 1)
    out_ref[...] = jnp.where(col < out_dim, z, sp)


@functools.partial(jax.jit, static_argnames=("out_dim",))
def _policy_forward_fused(x, w1, b1, w2, b2, w_head, b_head, *, out_dim):
    x = x.astype(jnp.float32)
    B, in_f = x.shape
    n_pad = w_head.shape[1]

    tile_b = _choose_tile_b(B)
    grid = (pl.cdiv(B, tile_b),)

    fused = pl.pallas_call(
        functools.partial(_policy_kernel, out_dim=out_dim),
        out_shape=jax.ShapeDtypeStruct((B, n_pad), jnp.float32),
        grid=grid,
        in_specs=[
            pl.BlockSpec((tile_b, in_f), lambda i: (i, 0)),    # x tile (unpadded K)
            pl.BlockSpec((in_f, HIDDEN), lambda i: (0, 0)),    # W1 (VMEM-resident)
            pl.BlockSpec((1, HIDDEN), lambda i: (0, 0)),       # b1
            pl.BlockSpec((HIDDEN, HIDDEN), lambda i: (0, 0)),  # W2
            pl.BlockSpec((1, HIDDEN), lambda i: (0, 0)),       # b2
            pl.BlockSpec((HIDDEN, n_pad), lambda i: (0, 0)),   # fused head W
            pl.BlockSpec((1, n_pad), lambda i: (0, 0)),        # fused head b
        ],
        out_specs=pl.BlockSpec((tile_b, n_pad), lambda i: (i, 0)),
        compiler_params=pltpu.CompilerParams(
            dimension_semantics=("parallel",)),
    )(x, w1, b1, w2, b2, w_head, b_head)

    loc = fused[:, :out_dim]
    scale = fused[:, out_dim:2 * out_dim]
    return loc, scale


def prepare_policy_params(params):
    """One-time (eager) prep: fuse the two output heads into a lane-dense
    [128, n_pad] weight / [1, n_pad] bias.  Do NOT call per forward pass."""
    (w1, b1, w2, b2, wloc, bloc, wsc, bsc) = params
    out_dim = int(wloc.shape[1])
    n_pad = _round_up(2 * out_dim, 128)

    w_head = (jnp.zeros((HIDDEN, n_pad), jnp.float32)
              .at[:, :out_dim].set(wloc)
              .at[:, out_dim:2 * out_dim].set(wsc))
    b_head = (jnp.zeros((1, n_pad), jnp.float32)
              .at[:, :out_dim].set(bloc)
              .at[:, out_dim:2 * out_dim].set(bsc))

    return (w1.astype(jnp.float32), b1.astype(jnp.float32),
            w2.astype(jnp.float32), b2.astype(jnp.float32),
            w_head, b_head, out_dim)


def policy_forward(x, prepared):
    """Run the Policy forward pass. Returns (loc, scale) of the Normal dist."""
    w1, b1, w2, b2, w_head, b_head, out_dim = prepared
    return _policy_forward_fused(x, w1, b1, w2, b2, w_head, b_head,
                                 out_dim=out_dim)


def _xavier_uniform(key, in_f, out_f, gain):
    # PyTorch xavier_uniform_: U(-a, a), a = gain * sqrt(6 / (fan_in + fan_out))
    a = gain * jnp.sqrt(6.0 / (in_f + out_f))
    # stored as [in_f, out_f] (pre-transposed vs. PyTorch's [out_f, in_f])
    return jax.random.uniform(key, (in_f, out_f), jnp.float32, -a, a)


def _bias_init(key, in_f, out_f):
    # PyTorch nn.Linear default bias init: U(-1/sqrt(fan_in), 1/sqrt(fan_in))
    bound = 1.0 / jnp.sqrt(float(in_f))
    return jax.random.uniform(key, (1, out_f), jnp.float32, -bound, bound)


def init_policy_params(key, input_size, output_size):
    tanh_gain = 5.0 / 3.0  # nn.init.calculate_gain('tanh')
    lin_gain = 1.0         # nn.init.calculate_gain('linear')
    ks = jax.random.split(key, 8)
    w1 = _xavier_uniform(ks[0], input_size, HIDDEN, tanh_gain)
    b1 = _bias_init(ks[1], input_size, HIDDEN)
    w2 = _xavier_uniform(ks[2], HIDDEN, HIDDEN, tanh_gain)
    b2 = _bias_init(ks[3], HIDDEN, HIDDEN)
    wloc = _xavier_uniform(ks[4], HIDDEN, output_size, lin_gain)
    bloc = _bias_init(ks[5], HIDDEN, output_size)
    wsc = _xavier_uniform(ks[6], HIDDEN, output_size, lin_gain)
    bsc = _bias_init(ks[7], HIDDEN, output_size)
    return (w1, b1, w2, b2, wloc, bloc, wsc, bsc)


def policy_forward_ref(x, params):
    """Pure-JAX reference for correctness checking."""
    (w1, b1, w2, b2, wloc, bloc, wsc, bsc) = params
    h1 = jnp.tanh(x @ w1 + b1)
    h2 = jnp.tanh(h1 @ w2 + b2)
    loc = h2 @ wloc + bloc
    scale = jax.nn.softplus(h2 @ wsc + bsc)
    return loc, scale


if __name__ == "__main__":
    key = jax.random.PRNGKey(0)
    k_params, k_x = jax.random.split(key)

    batch = 8
    input_size = 16
    output_size = 8

    params = init_policy_params(k_params, input_size, output_size)
    prepared = prepare_policy_params(params)   # one-time head fusion
    x = jax.random.normal(k_x, (batch, input_size), jnp.float32)

    loc, scale = policy_forward(x, prepared)
    jax.block_until_ready((loc, scale))

    loc_ref, scale_ref = policy_forward_ref(x, params)
    assert loc.shape == (batch, output_size) and scale.shape == (batch, output_size)
    assert jnp.allclose(loc, loc_ref, atol=1e-5, rtol=1e-5)
    assert jnp.allclose(scale, scale_ref, atol=1e-5, rtol=1e-5)
    assert bool(jnp.all(scale > 0))  # valid Normal scale

    # Larger, non-multiple-of-8 batch: exercises the >=2-step grid (both v7x
    # TensorCores) and the ragged last block (no batch padding in HBM).
    big_b = 1061
    x_big = jax.random.normal(jax.random.PRNGKey(1), (big_b, input_size), jnp.float32)
    loc_b, scale_b = policy_forward(x_big, prepared)
    jax.block_until_ready((loc_b, scale_b))
    loc_bref, scale_bref = policy_forward_ref(x_big, params)
    assert loc_b.shape == (big_b, output_size)
    assert jnp.allclose(loc_b, loc_bref, atol=1e-5, rtol=1e-5)
    assert jnp.allclose(scale_b, scale_bref, atol=1e-5, rtol=1e-5)

    # TODO(synk): Normal(...).sample()/tanh in act() is distribution-sampling
    # glue, left outside the kernel (would use pltpu.prng_* + Box-Muller).
    print("KERNEL_OK")
</pallas_src>

<mosaic_0001>
module attributes {stable_mosaic.version = 11 : i64} {
  func.func @_policy_kernel(%arg0: i32, %arg1: memref<8x16xf32, #tpu.memory_space<vmem>>, %arg2: memref<16x128xf32, #tpu.memory_space<vmem>>, %arg3: memref<1x128xf32, #tpu.memory_space<vmem>>, %arg4: memref<128x128xf32, #tpu.memory_space<vmem>>, %arg5: memref<1x128xf32, #tpu.memory_space<vmem>>, %arg6: memref<128x128xf32, #tpu.memory_space<vmem>>, %arg7: memref<1x128xf32, #tpu.memory_space<vmem>>, %arg8: memref<8x128xf32, #tpu.memory_space<vmem>>) attributes {dimension_semantics = [#tpu.dimension_semantics<parallel>], iteration_bounds = array<i64: 1>, scalar_prefetch = 0 : i64, scratch_operands = 0 : i64, tpu.core_type = #tpu.core_type<tc>, window_params = [{transform_indices = @transform_0, window_bounds = array<i64: 8, 16>}, {pipeline_mode = #tpu.pipeline_mode<synchronous>, transform_indices = @transform_1, window_bounds = array<i64: 16, 128>}, {pipeline_mode = #tpu.pipeline_mode<synchronous>, transform_indices = @transform_2, window_bounds = array<i64: 1, 128>}, {pipeline_mode = #tpu.pipeline_mode<synchronous>, transform_indices = @transform_3, window_bounds = array<i64: 128, 128>}, {pipeline_mode = #tpu.pipeline_mode<synchronous>, transform_indices = @transform_4, window_bounds = array<i64: 1, 128>}, {pipeline_mode = #tpu.pipeline_mode<synchronous>, transform_indices = @transform_5, window_bounds = array<i64: 128, 128>}, {pipeline_mode = #tpu.pipeline_mode<synchronous>, transform_indices = @transform_6, window_bounds = array<i64: 1, 128>}, {transform_indices = @transform_7, window_bounds = array<i64: 8, 128>}]} {
    %c0 = arith.constant 0 : index
    %c0_0 = arith.constant 0 : index
    %0 = vector.load %arg1[%c0, %c0_0] : memref<8x16xf32, #tpu.memory_space<vmem>>, vector<8x16xf32>
    %c0_1 = arith.constant 0 : index
    %c0_2 = arith.constant 0 : index
    %1 = vector.load %arg2[%c0_1, %c0_2] : memref<16x128xf32, #tpu.memory_space<vmem>>, vector<16x128xf32>
    %cst = arith.constant dense<0.000000e+00> : vector<8x128xf32>
    %2 = tpu.matmul %0, %1, %cst {dimension_numbers = #tpu.dot_dimension_numbers<[1], [0], [0], [1], [0, 0, 1, 1], [], []>} : vector<8x16xf32>, vector<16x128xf32>, vector<8x128xf32> -> vector<8x128xf32>
    %c0_3 = arith.constant 0 : index
    %c0_4 = arith.constant 0 : index
    %3 = vector.load %arg3[%c0_3, %c0_4] : memref<1x128xf32, #tpu.memory_space<vmem>>, vector<1x128xf32>
    %4 = vector.broadcast %3 : vector<1x128xf32> to vector<8x128xf32>
    %5 = arith.addf %2, %4 : vector<8x128xf32>
    %6 = math.tanh %5 : vector<8x128xf32>
    %c0_5 = arith.constant 0 : index
    %c0_6 = arith.constant 0 : index
    %7 = vector.load %arg4[%c0_5, %c0_6] : memref<128x128xf32, #tpu.memory_space<vmem>>, vector<128x128xf32>
    %cst_7 = arith.constant dense<0.000000e+00> : vector<8x128xf32>
    %8 = tpu.matmul %6, %7, %cst_7 {dimension_numbers = #tpu.dot_dimension_numbers<[1], [0], [0], [1], [0, 0, 1, 1], [], []>} : vector<8x128xf32>, vector<128x128xf32>, vector<8x128xf32> -> vector<8x128xf32>
    %c0_8 = arith.constant 0 : index
    %c0_9 = arith.constant 0 : index
    %9 = vector.load %arg5[%c0_8, %c0_9] : memref<1x128xf32, #tpu.memory_space<vmem>>, vector<1x128xf32>
    %10 = vector.broadcast %9 : vector<1x128xf32> to vector<8x128xf32>
    %11 = arith.addf %8, %10 : vector<8x128xf32>
    %12 = math.tanh %11 : vector<8x128xf32>
    %c0_10 = arith.constant 0 : index
    %c0_11 = arith.constant 0 : index
    %13 = vector.load %arg6[%c0_10, %c0_11] : memref<128x128xf32, #tpu.memory_space<vmem>>, vector<128x128xf32>
    %cst_12 = arith.constant dense<0.000000e+00> : vector<8x128xf32>
    %14 = tpu.matmul %12, %13, %cst_12 {dimension_numbers = #tpu.dot_dimension_numbers<[1], [0], [0], [1], [0, 0, 1, 1], [], []>} : vector<8x128xf32>, vector<128x128xf32>, vector<8x128xf32> -> vector<8x128xf32>
    %c0_13 = arith.constant 0 : index
    %c0_14 = arith.constant 0 : index
    %15 = vector.load %arg7[%c0_13, %c0_14] : memref<1x128xf32, #tpu.memory_space<vmem>>, vector<1x128xf32>
    %16 = vector.broadcast %15 : vector<1x128xf32> to vector<8x128xf32>
    %17 = arith.addf %14, %16 : vector<8x128xf32>
    %cst_15 = arith.constant 0.000000e+00 : f32
    %18 = vector.broadcast %cst_15 : f32 to vector<8x128xf32>
    %19 = arith.maximumf %17, %18 : vector<8x128xf32>
    %20 = math.absf %17 : vector<8x128xf32>
    %cst_16 = arith.constant 0.000000e+00 : f32
    %21 = vector.broadcast %cst_16 : f32 to vector<8x128xf32>
    %22 = arith.subf %21, %20 : vector<8x128xf32>
    %23 = math.exp %22 : vector<8x128xf32>
    %24 = math.log1p %23 : vector<8x128xf32>
    %25 = arith.addf %19, %24 : vector<8x128xf32>
    %26 = tpu.iota {dimensions = array<i32: 1>} : vector<8x128xi32>
    %c8_i32 = arith.constant 8 : i32
    %27 = vector.broadcast %c8_i32 : i32 to vector<8x128xi32>
    %28 = arith.cmpi slt, %26, %27 : vector<8x128xi32>
    %29 = arith.select %28, %17, %25 : vector<8x128xi1>, vector<8x128xf32>
    %c0_17 = arith.constant 0 : index
    %c0_18 = arith.constant 0 : index
    %30 = vector.load %arg8[%c0_17, %c0_18] : memref<8x128xf32, #tpu.memory_space<vmem>>, vector<8x128xf32>
    tpu.vector_store %arg8[%c0_17, %c0_18], %29 {strides = array<i32>} : memref<8x128xf32, #tpu.memory_space<vmem>>, vector<8x128xf32>,
    return
  }
  func.func @transform_0(%arg0: i32) -> (i32, i32) {
    %c0_i32 = arith.constant 0 : i32
    %c0_i32_0 = arith.constant 0 : i32
    return %arg0, %c0_i32 : i32, i32
  }
  func.func @transform_1(%arg0: i32) -> (i32, i32) {
    %c0_i32 = arith.constant 0 : i32
    %c0_i32_0 = arith.constant 0 : i32
    %c0_i32_1 = arith.constant 0 : i32
    return %c0_i32, %c0_i32_0 : i32, i32
  }
  func.func @transform_2(%arg0: i32) -> (i32, i32) {
    %c0_i32 = arith.constant 0 : i32
    %c0_i32_0 = arith.constant 0 : i32
    %c0_i32_1 = arith.constant 0 : i32
    return %c0_i32, %c0_i32_0 : i32, i32
  }
  func.func @transform_3(%arg0: i32) -> (i32, i32) {
    %c0_i32 = arith.constant 0 : i32
    %c0_i32_0 = arith.constant 0 : i32
    %c0_i32_1 = arith.constant 0 : i32
    return %c0_i32, %c0_i32_0 : i32, i32
  }
  func.func @transform_4(%arg0: i32) -> (i32, i32) {
    %c0_i32 = arith.constant 0 : i32
    %c0_i32_0 = arith.constant 0 : i32
    %c0_i32_1 = arith.constant 0 : i32
    return %c0_i32, %c0_i32_0 : i32, i32
  }
  func.func @transform_5(%arg0: i32) -> (i32, i32) {
    %c0_i32 = arith.constant 0 : i32
    %c0_i32_0 = arith.constant 0 : i32
    %c0_i32_1 = arith.constant 0 : i32
    return %c0_i32, %c0_i32_0 : i32, i32
  }
  func.func @transform_6(%arg0: i32) -> (i32, i32) {
    %c0_i32 = arith.constant 0 : i32
    %c0_i32_0 = arith.constant 0 : i32
    %c0_i32_1 = arith.constant 0 : i32
    return %c0_i32, %c0_i32_0 : i32, i32
  }
  func.func @transform_7(%arg0: i32) -> (i32, i32) {
    %c0_i32 = arith.constant 0 : i32
    %c0_i32_0 = arith.constant 0 : i32
    return %arg0, %c0_i32 : i32, i32
  }
}

</mosaic_0001>

<bundles_post_ra>
// kernel: _policy_forward_fused.1
= control target key start
LH: loop header
LB: loop body
LE: loop exit
PB: predicated region body
PF: predicated region fallthrough
CT: control target
= control target key end

     0   :  { %12 = vsyncpa [#allocation3], 0  ;;  %s796_s0 = inlined_call_operand.hbm [shape: f32[8,16], index: 0, kind: input, shape index: {}]   ;;  %s797_s1 = inlined_call_operand.hbm [shape: f32[16,128], index: 1, kind: input, shape index: {}]   ;;  %s798_s2 = inlined_call_operand.vmem [shape: f32[1,128], index: 2, kind: input, shape index: {}]   ;;  %s799_s3 = inlined_call_operand.hbm [shape: f32[128,128], index: 3, kind: input, shape index: {}]   ;;  %s800_s4 = inlined_call_operand.vmem [shape: f32[1,128], index: 4, kind: input, shape index: {}]   ;;  %s801_s5 = inlined_call_operand.hbm [shape: f32[128,128], index: 5, kind: input, shape index: {}]   ;;  %s802_s6 = inlined_call_operand.vmem [shape: f32[1,128], index: 6, kind: input, shape index: {}]   ;;  %s803_s7 = inlined_call_operand.vmem [shape: f32[8,128], index: 7, kind: output, shape index: {}]  }
   0x1   :  { %13 = vsyncpa [#allocation5], 0 }
   0x2   :  { %14 = vsyncpa [#allocation8], 0  ;;  %s658_s24 = smov [#allocation4]   ;;  %s564_s28 = scalar_lea.hbm %s797_s1, 256 }
   0x3   :  { %s30_s25 = sshll.u32 %s658_s24, 4  ;;  %p565_p0 = scmp.ne.s32.totalorder %s797_s1, %s564_s28  ;;  %s31_s25 = int_to_ptr.vmem [resolvable:$true] %s30_s25 }
   0x4   :  { %p568_p1 = scmp.lt.u32.totalorder %s564_s28, %s797_s1 }
   0x6   :  { %p570_p2 = pnand %p568_p1, %p565_p0 }
   0x8   :  { %573 = shalt.err (!%p570_p2)
}
   0x9   :  { %s574_s10 = scalar_lea.vmem %s31_s25, 256  ;;  %p579_p4 = scmp.lt.s32.totalorder %s31_s25, %s31_s25 }
   0xa   :  { %p575_p3 = scmp.ne.s32.totalorder %s31_s25, %s574_s10  ;;  %p580_p5 = scmp.lt.s32.totalorder %s574_s10, %s574_s10 }
   0xc   :  { %p581_p6 = por %p580_p5, %p579_p4 }
   0xe   :  { %p582_p7 = pnand %p581_p6, %p575_p3 }
  0x10   :  { %585 = shalt.err (!%p582_p7)
}
  0x11   :  { %s659_s11 = smov 128   ;;  %s660_s12 = smov 8  }
  0x12   :  { %36 = dma.hbm_to_vmem [thread:$0]  %s797_s1, 256, %s31_s25, [#allocation5], %s659_s11, %s659_s11, %s660_s12  }
  0x13   :  { %s661_s15 = smov [#allocation2]   ;;  %s662_s17 = smov [#allocation6]  }
  0x14   :  { %s21_s16 = sshll.u32 %s661_s15, 4  ;;  %s44_s18 = sshll.u32 %s662_s17, 4  ;;  %s22_s16 = int_to_ptr.vmem [resolvable:$true] %s21_s16  ;;  %s45_s18 = int_to_ptr.vmem [resolvable:$true] %s44_s18 }
  0x15   :  { %s586_s21 = scalar_lea.hbm %s796_s0, 128 }
  0x16   :  { %p587_p8 = scmp.ne.s32.totalorder %s796_s0, %s586_s21  ;;  %p590_p9 = scmp.lt.u32.totalorder %s586_s21, %s796_s0 }
  0x18   :  { %p592_p10 = pnand %p590_p9, %p587_p8 }
  0x1a   :  { %595 = shalt.err (!%p592_p10)
}
  0x1b   :  { %s596_s1 = scalar_lea.vmem %s22_s16, 128  ;;  %p601_p12 = scmp.lt.s32.totalorder %s22_s16, %s22_s16 }
  0x1c   :  { %p597_p11 = scmp.ne.s32.totalorder %s22_s16, %s596_s1  ;;  %p602_p13 = scmp.lt.s32.totalorder %s596_s1, %s596_s1 }
  0x1e   :  { %p603_p0 = por %p602_p13, %p601_p12 }
  0x20   :  { %p604_p1 = pnand %p603_p0, %p597_p11 }
  0x22   :  { %607 = shalt.err (!%p604_p1)
}
  0x23   :  { %24 = dma.hbm_to_vmem [thread:$0]  %s796_s0, 128, %s22_s16, [#allocation3]  }
  0x24   :  { %s608_s30 = scalar_lea.hbm %s799_s3, 2048 }
  0x25   :  { %p609_p2 = scmp.ne.s32.totalorder %s799_s3, %s608_s30  ;;  %p612_p3 = scmp.lt.u32.totalorder %s608_s30, %s799_s3 }
  0x27   :  { %p614_p4 = pnand %p612_p3, %p609_p2 }
  0x29   :  { %617 = shalt.err (!%p614_p4)
}
  0x2a   :  { %s618_s14 = scalar_lea.vmem %s45_s18, 2048  ;;  %p623_p6 = scmp.lt.s32.totalorder %s45_s18, %s45_s18 }
  0x2b   :  { %p619_p5 = scmp.ne.s32.totalorder %s45_s18, %s618_s14  ;;  %p624_p7 = scmp.lt.s32.totalorder %s618_s14, %s618_s14 }
  0x2d   :  { %p625_p8 = por %p624_p7, %p623_p6 }
  0x2f   :  { %p626_p9 = pnand %p625_p8, %p619_p5 }
  0x31   :  { %629 = shalt.err (!%p626_p9)
}
  0x32   :  { %50 = dma.hbm_to_vmem [thread:$0]  %s799_s3, 2048, %s45_s18, [#allocation5], %s659_s11, %s659_s11, %s660_s12  }
  0x33   :  { %s663_s16 = smov [#allocation7]   ;;  %s630_s21 = scalar_lea.hbm %s801_s5, 2048 }
  0x34   :  { %s58_s17 = sshll.u32 %s663_s16, 4  ;;  %p631_p10 = scmp.ne.s32.totalorder %s801_s5, %s630_s21  ;;  %s59_s17 = int_to_ptr.vmem [resolvable:$true] %s58_s17 }
  0x35   :  { %p634_p11 = scmp.lt.u32.totalorder %s630_s21, %s801_s5 }
  0x37   :  { %p636_p12 = pnand %p634_p11, %p631_p10 }
  0x39   :  { %639 = shalt.err (!%p636_p12)
}
  0x3a   :  { %s640_s1 = scalar_lea.vmem %s59_s17, 2048  ;;  %p645_p0 = scmp.lt.s32.totalorder %s59_s17, %s59_s17 }
  0x3b   :  { %p641_p13 = scmp.ne.s32.totalorder %s59_s17, %s640_s1  ;;  %p646_p1 = scmp.lt.s32.totalorder %s640_s1, %s640_s1 }
  0x3d   :  { %p647_p2 = por %p646_p1, %p645_p0 }
  0x3f   :  { %p648_p3 = pnand %p647_p2, %p641_p13 }
  0x41   :  { %651 = shalt.err (!%p648_p3)
}
  0x42   :  { %64 = dma.hbm_to_vmem [thread:$0]  %s801_s5, 2048, %s59_s17, [#allocation8], %s659_s11, %s659_s11, %s660_s12  }
  0x43   :  { %652 = dma.done.wait [#allocation3], 128  }
  0x44   :  { %653 = vsyncadd [#allocation3], 4294967168 }
  0x45   :  { %654 = dma.done.wait [#allocation5], 2304  }
  0x46   :  { %655 = vsyncadd [#allocation5], 4294964992 }
  0x47   :  { %656 = dma.done.wait [#allocation8], 2048  }
  0x48   :  { %657 = vsyncadd [#allocation8], 4294965248  ;;  %v664_v0 = vmov 0.0|0.0   ;;  %vm665_vm0 = vmmov 0   ;;  %v666_v1 = vmov 0.0   ;;  %v80_v2 = vld [vmem:[#allocation4] sm:$0xff] }
  0x49   :  { %496 = vmatprep.subr.bf16.mxu0 %v664_v0  ;;  %423 = vmatprep.mubr.msk.f32.mxu0 %vm665_vm0, %v666_v1  ;;  %v81_v3 = vld [vmem:[#allocation4 + $0x8] sm:$0xff]  ;;  %v164_v5 = vld [vmem:[#allocation6] sm:$0xff]  ;;  %v165_v6 = vld [vmem:[#allocation6 + $0x8] sm:$0xff]  ;;  %vm89_vm1 = vcmask 130048  }
  0x4a   :  { %499 = vmatprep.subr.bf16.mxu1 %v664_v0  ;;  %458 = vmatprep.mubr.msk.f32.mxu1 %vm665_vm0, %v666_v1  ;;  %v497_v4 = vpack.c.bf16 %v81_v3, %v80_v2  ;;  %v166_v7 = vld [vmem:[#allocation6 + $0x10] sm:$0xff]  ;;  %v500_v8 = vpack.c.bf16 %v165_v6, %v164_v5  ;;  %v167_v9 = vld [vmem:[#allocation6 + $0x18] sm:$0xff]  ;;  %v79_v10 = vld [vmem:[#allocation2] sm:$0xff] }
  0x4b   :  { %v503_v11 = vpack.c.bf16 %v167_v9, %v166_v7  ;;  %v168_v12 = vld [vmem:[#allocation6 + $0x20] sm:$0xff]  ;;  %v169_v13 = vld [vmem:[#allocation6 + $0x28] sm:$0xff]  ;;  %v170_v15 = vld [vmem:[#allocation6 + $0x30] sm:$0xff] }
  0x4c   :  { %498 = vmatpush3.bf16.msra.mxu0 %v497_v4  ;;  %501 = vmatpush3.bf16.msra.mxu1 %v500_v8  ;;  %v506_v14 = vpack.c.bf16 %v169_v13, %v168_v12  ;;  %v171_v16 = vld [vmem:[#allocation6 + $0x38] sm:$0xff]  ;;  %v172_v18 = vld [vmem:[#allocation6 + $0x40] sm:$0xff]  ;;  %v173_v19 = vld [vmem:[#allocation6 + $0x48] sm:$0xff] }
  0x4d   :  { %523 = vmatprep.subr.bf16.mxu0 %v664_v0  ;;  %502 = vmatprep.subr.bf16.mxu1 %v664_v0  ;;  %v509_v17 = vpack.c.bf16 %v171_v16, %v170_v15  ;;  %v512_v20 = vpack.c.bf16 %v173_v19, %v172_v18  ;;  %v174_v21 = vld [vmem:[#allocation6 + $0x50] sm:$0xff]  ;;  %v175_v22 = vld [vmem:[#allocation6 + $0x58] sm:$0xff]  ;;  %v176_v24 = vld [vmem:[#allocation6 + $0x60] sm:$0xff] }
  0x4e   :  { %v515_v23 = vpack.c.bf16 %v175_v22, %v174_v21  ;;  %v177_v25 = vld [vmem:[#allocation6 + $0x68] sm:$0xff]  ;;  %v178_v27 = vld [vmem:[#allocation6 + $0x70] sm:$0xff]  ;;  %v179_v28 = vld [vmem:[#allocation6 + $0x78] sm:$0xff] }
  0x4f   :  { %424 = vmatmul.mubr.msk.f32.vlgmr.msra.gmra.mrb[0].mxu0 %vm89_vm1, %v79_v10  ;;  %v518_v26 = vpack.c.bf16 %v177_v25, %v176_v24  ;;  %v521_v29 = vpack.c.bf16 %v179_v28, %v178_v27  ;;  %v258_v30 = vld [vmem:[#allocation7] sm:$0xff]  ;;  %v259_v31 = vld [vmem:[#allocation7 + $0x8] sm:$0xff]  ;;  %v260_v32 = vld [vmem:[#allocation7 + $0x10] sm:$0xff]  ;;  %v366_v10 = vlaneseq }
  0x50   :  { %493 = vmatprep.mubr.msk.f32.mxu0 %vm665_vm0, %v666_v1  ;;  %504 = vmatpush3.bf16.msra.mxu1 %v503_v11  ;;  %v524_v33 = vpack.c.bf16 %v259_v31, %v258_v30  ;;  %v261_v34 = vld [vmem:[#allocation7 + $0x18] sm:$0xff]  ;;  %v262_v36 = vld [vmem:[#allocation7 + $0x20] sm:$0xff]  ;;  %v263_v37 = vld [vmem:[#allocation7 + $0x28] sm:$0xff] }
  0x51   :  { %505 = vmatprep.subr.bf16.mxu1 %v664_v0  ;;  %v527_v35 = vpack.c.bf16 %v261_v34, %v260_v32  ;;  %v530_v38 = vpack.c.bf16 %v263_v37, %v262_v36  ;;  %v264_v39 = vld [vmem:[#allocation7 + $0x30] sm:$0xff]  ;;  %v265_v40 = vld [vmem:[#allocation7 + $0x38] sm:$0xff]  ;;  %v266_v42 = vld [vmem:[#allocation7 + $0x40] sm:$0xff]  ;;  %v367_v13 = vand.u32 127, %v366_v10 }
  0x52   :  { %525 = vmatpush3.bf16.msra.mxu0 %v524_v33  ;;  %v533_v41 = vpack.c.bf16 %v265_v40, %v264_v39  ;;  %v267_v43 = vld [vmem:[#allocation7 + $0x48] sm:$0xff]  ;;  %v378_v45 = vld [vmem:[%s798_s2] ss:$0 sm:$0xff]  ;;  %v268_v50 = vld [vmem:[#allocation7 + $0x50] sm:$0xff] }
  0x53   :  { %526 = vmatprep.subr.bf16.mxu0 %v664_v0  ;;  %v536_v44 = vpack.c.bf16 %v267_v43, %v266_v42  ;;  %v269_v51 = vld [vmem:[#allocation7 + $0x58] sm:$0xff]  ;;  %v270_v53 = vld [vmem:[#allocation7 + $0x60] sm:$0xff]  ;;  %v271_v54 = vld [vmem:[#allocation7 + $0x68] sm:$0xff]  ;;  %vm368_vm3 = vcmp.lt.s32.totalorder %v367_v13, 8 }
  0x54   :  { %507 = vmatpush3.bf16.msra.mxu1 %v506_v14  ;;  %v539_v52 = vpack.c.bf16 %v269_v51, %v268_v50  ;;  %v542_v55 = vpack.c.bf16 %v271_v54, %v270_v53  ;;  %v272_v56 = vld [vmem:[#allocation7 + $0x70] sm:$0xff]  ;;  %v273_v57 = vld [vmem:[#allocation7 + $0x78] sm:$0xff]  ;;  %v380_v59 = vld [vmem:[%s800_s4] ss:$0 sm:$0xff] }
  0x55   :  { %508 = vmatprep.subr.bf16.mxu1 %v664_v0  ;;  %v545_v58 = vpack.c.bf16 %v273_v57, %v272_v56  ;;  %v381_v1 = vld [vmem:[%s802_s6] ss:$0 sm:$0xff] }
  0x56   :  { %528 = vmatpush3.bf16.msra.mxu0 %v527_v35 }
  0x57   :  { %529 = vmatprep.subr.bf16.mxu0 %v664_v0 }
  0x58   :  { %510 = vmatpush3.bf16.msra.mxu1 %v509_v17 }
  0x59   :  { %511 = vmatprep.subr.bf16.mxu1 %v664_v0 }
  0x5a   :  { %531 = vmatpush3.bf16.msra.mxu0 %v530_v38 }
  0x5b   :  { %532 = vmatprep.subr.bf16.mxu0 %v664_v0 }
  0x5c   :  { %513 = vmatpush3.bf16.msra.mxu1 %v512_v20 }
  0x5d   :  { %514 = vmatprep.subr.bf16.mxu1 %v664_v0 }
  0x5e   :  { %534 = vmatpush3.bf16.msra.mxu0 %v533_v41 }
  0x5f   :  { %535 = vmatprep.subr.bf16.mxu0 %v664_v0 }
  0x60   :  { %516 = vmatpush3.bf16.msra.mxu1 %v515_v23 }
  0x61   :  { %517 = vmatprep.subr.bf16.mxu1 %v664_v0 }
  0x62   :  { %537 = vmatpush3.bf16.msra.mxu0 %v536_v44 }
  0x63   :  { %538 = vmatprep.subr.bf16.mxu0 %v664_v0 }
  0x64   :  { %519 = vmatpush3.bf16.msra.mxu1 %v518_v26 }
  0x65   :  { %520 = vmatprep.subr.bf16.mxu1 %v664_v0 }
  0x66   :  { %540 = vmatpush3.bf16.msra.mxu0 %v539_v52 }
  0x67   :  { %541 = vmatprep.subr.bf16.mxu0 %v664_v0 }
  0x68   :  { %522 = vmatpush3.bf16.msra.mxu1 %v521_v29 }
  0x6a   :  { %543 = vmatpush3.bf16.msra.mxu0 %v542_v55 }
  0x6b   :  { %544 = vmatprep.subr.bf16.mxu0 %v664_v0 }
  0x6e   :  { %546 = vmatpush3.bf16.msra.mxu0 %v545_v58 }
 0x122   :  { %v159_v46 = vpop.f32.mrb[0].mxu0 }
 0x123   :  { %v160_v47 = vadd.f32 %v378_v45, %v159_v46  ;;  %v425_v48 = vpop.f32.mrb[1].mxu0 }
 0x125   :  { %556 = vtanh.f32 %v160_v47 }
 0x12f   :  { %v557_v49 = vpop.eup %556 }
 0x130   :  { %459 = vmatmul.mubr.f32.vlgmr.msra.gmra.mrb[0].mxu1 %v557_v49 }
 0x203   :  { %v253_v60 = vpop.f32.mrb[0].mxu1 }
 0x204   :  { %v254_v61 = vadd.f32 %v380_v59, %v253_v60  ;;  %v460_v62 = vpop.f32.mrb[1].mxu1 }
 0x206   :  { %558 = vtanh.f32 %v254_v61 }
 0x210   :  { %v559_v63 = vpop.eup %558 }
 0x211   :  { %494 = vmatmul.mubr.f32.vlgmr.msra.gmra.mrb[2].mxu0 %v559_v63 }
 0x2e4   :  { %v347_v2 = vpop.f32.mrb[2].mxu0 }
 0x2e5   :  { %v348_v3 = vadd.f32 %v381_v1, %v347_v2  ;;  %v495_v4 = vpop.f32.mrb[3].mxu0 }
 0x2e7   :  { %v352_v5 = vand.u32 2147483647, %v348_v3  ;;  %v351_v17 = vmax.f32 %v348_v3, 0.0 }
 0x2e9   :  { %v353_v0 = vsub.f32 0.0, %v352_v5 }
 0x2eb   :  { %v354_v6 = vmul.f32 1.442695, %v353_v0 }
 0x2ed   :  { %560 = vpow2.f32 %v354_v6 }
 0x2f7   :  { %v561_v7 = vpop.eup %560 }
 0x2f8   :  { %v356_v8 = vadd.f32 1.0, %v561_v7  ;;  %v359_v9 = vmul.f32 -0.5, %v561_v7  ;;  %v362_v12 = vand.u32 2147483647, %v561_v7 }
 0x2fa   :  { %562 = vlog2.f32 %v356_v8  ;;  %v360_v11 = vadd.f32 1.0, %v359_v9  ;;  %vm363_vm2 = vcmp.lt.f32.partialorder %v362_v12, 0.0004427343 }
 0x2fc   :  { %v361_v16 = vmul.f32 %v561_v7, %v360_v11 }
 0x304   :  { %v563_v14 = vpop.eup %562 }
 0x305   :  { %v358_v15 = vmul.f32 0.6931472, %v563_v14 }
 0x307   :  { %v364_v18 = vsel %vm363_vm2, %v361_v16, %v358_v15 }
 0x308   :  { %v365_v19 = vadd.f32 %v364_v18, %v351_v17 }
 0x30a   :  { %v369_v20 = vsel %vm368_vm3, %v348_v3, %v365_v19 }
 0x30b   :  { %370 = vst [vmem:[%s803_s7] sm:$0xff] %v369_v20 }
 0x30c   :  { %375 = vsyncpa [#allocation3], 1 }
 0x30d   :  { %376 = vsyncpa [#allocation5], 1 }
 0x30e   :  { %377 = vsyncpa [#allocation8], 1 }

</bundles_post_ra>
